<compile_context>
chip_gen: v7x
topology: tpu7x:2x2x1
jax: 0.10.0
libtpu: 0.0.40
codegen_flags: <defaults>
</compile_context>

<pallas_src>
import functools

import jax
import jax.numpy as jnp
from jax.experimental import pallas as pl
from jax.experimental.pallas import tpu as pltpu

_LANES = 128
_SUBLANES = 8
_MAX_TILE_BYTES = 1 << 20       # ~1 MiB per operand per pipeline buffer
_VMEM_LIMIT_BYTES = 32 << 20    # safe on v5e/v6e (128 MiB) and v7x (64 MiB)


def _round_up(x, m):
    return ((x + m - 1) // m) * m


def _sublane_granularity(*dtypes):
    """Native sublane packing: 8 rows for 32-bit, 16 for 16-bit, 32 for 8-bit."""
    g = _SUBLANES
    for dt in dtypes:
        itemsize = jnp.dtype(dt).itemsize
        if itemsize < 4:
            g = max(g, _SUBLANES * (4 // itemsize))
    return g


def _bce_kernel(x_ref, t_ref, o_ref, *, focal_gamma):
    x = x_ref[...].astype(jnp.float32)
    t = t_ref[...].astype(jnp.float32)

    # t_zeroone: positive targets -> 1.0, everything else untouched
    t_zeroone = jnp.where(t > 0.0, jnp.float32(1.0), t)

    # binary_cross_entropy_with_logits, numerically stable:
    #   max(x, 0) - x * t + log1p(exp(-|x|))
    bce = jnp.maximum(x, 0.0) - x * t_zeroone + jnp.log1p(jnp.exp(-jnp.abs(x)))

    # clamp_min(bce, 0.02)
    bce = jnp.maximum(bce, jnp.float32(0.02))

    if focal_gamma != 0.0:
        pt = jnp.exp(-bce)
        base = 1.0 - pt
        g = float(focal_gamma)
        if g.is_integer() and 0 < g <= 8:
            # Common case (e.g. gamma=2): explicit multiplies instead of the
            # generic pow -> exp(g*log(.)) lowering (saves 2 EUP ops/element).
            focal = base
            for _ in range(int(g) - 1):
                focal = focal * base
        else:
            focal = base ** jnp.float32(focal_gamma)
        # TODO(synk): detach_focal (stop-gradient on `focal`) must live in a
        # custom_vjp wrapper around pallas_call; pallas_call is not
        # auto-differentiated, so an in-kernel stop_gradient has no effect.
        bce = focal * bce

    # weight re-scaling where the target was modified (t > 0 and t != 1)
    weight_mask = t_zeroone != t
    bce = jnp.where(weight_mask, bce * t, bce)

    o_ref[...] = bce.astype(o_ref.dtype)


def bce_loss(x, t, *, focal_gamma=0.0, detach_focal=False, out_dtype=None):
    """Elementwise Bce loss. x, t: same shape (any rank, e.g. NCHW)."""
    assert x.shape == t.shape, (x.shape, t.shape)
    del detach_focal  # forward-pass no-op; see TODO(synk) in the kernel
    orig_shape = x.shape
    if out_dtype is None:
        out_dtype = x.dtype  # match PyTorch: loss returned in the logit dtype

    # Keep native dtype (kernel casts per-tile) -> no full-array dtype copies.
    xf = x.reshape(-1)
    tf = t.reshape(-1)
    n = xf.shape[0]

    # Pad only to lane width (128). Zero-copy whenever n % 128 == 0.
    n_pad = (-n) % _LANES
    if n_pad:
        # TODO(synk): a ragged-tail split (Pallas on the aligned bulk + a tiny
        # pure-JAX tail) would avoid these extra HBM passes on unaligned n.
        xf = jnp.pad(xf, (0, n_pad))
        tf = jnp.pad(tf, (0, n_pad))
    n_padded = n + n_pad
    rows = n_padded // _LANES

    x2 = xf.reshape(rows, _LANES)
    t2 = tf.reshape(rows, _LANES)

    # Tiling policy: the largest lane-dense tile that keeps each pipeline
    # buffer around 1 MiB, split into as few roughly-equal blocks as possible.
    gran = _sublane_granularity(x.dtype, t.dtype, out_dtype)
    max_itemsize = max(jnp.dtype(d).itemsize for d in (x.dtype, t.dtype, out_dtype))
    max_rows = max(gran, (_MAX_TILE_BYTES // (_LANES * max_itemsize)) // gran * gran)

    n_steps = pl.cdiv(rows, max_rows)
    tile_rows = max(gran, _round_up(pl.cdiv(rows, n_steps), gran))
    # Never exceed the array: a block equal to the full extent is always legal
    # (even when rows % gran != 0); otherwise tile_rows is gran-aligned.
    tile_rows = min(tile_rows, rows)
    grid = (pl.cdiv(rows, tile_rows),)

    kernel = functools.partial(_bce_kernel, focal_gamma=focal_gamma)

    # Transcendentals per element: exp(-|x|), log1p [, exp(-bce) [, pow=exp+log]]
    if focal_gamma == 0.0:
        n_trans = 2
    elif float(focal_gamma).is_integer() and 0 < float(focal_gamma) <= 8:
        n_trans = 3
    else:
        n_trans = 5
    bytes_per_elem = (jnp.dtype(x.dtype).itemsize + jnp.dtype(t.dtype).itemsize
                      + jnp.dtype(out_dtype).itemsize)
    cost = pl.CostEstimate(
        flops=10 * n_padded,
        transcendentals=n_trans * n_padded,
        bytes_accessed=n_padded * bytes_per_elem,
    )

    out2 = pl.pallas_call(
        kernel,
        out_shape=jax.ShapeDtypeStruct((rows, _LANES), out_dtype),
        grid_spec=pltpu.PrefetchScalarGridSpec(
            num_scalar_prefetch=0,
            grid=grid,
            in_specs=[
                pl.BlockSpec((tile_rows, _LANES), lambda i: (i, 0)),
                pl.BlockSpec((tile_rows, _LANES), lambda i: (i, 0)),
            ],
            out_specs=pl.BlockSpec((tile_rows, _LANES), lambda i: (i, 0)),
        ),
        compiler_params=pltpu.CompilerParams(
            dimension_semantics=("parallel",),
            vmem_limit_bytes=_VMEM_LIMIT_BYTES,
        ),
        cost_estimate=cost,
    )(x2, t2)

    out = out2.reshape(-1)
    if n_pad:
        out = out[:n]
    return out.reshape(orig_shape)


def _bce_reference(x, t, *, focal_gamma=0.0):
    """Pure-JAX reference mirroring the PyTorch module."""
    x = x.astype(jnp.float32)
    t = t.astype(jnp.float32)
    t_zeroone = jnp.where(t > 0.0, 1.0, t)
    bce = jnp.maximum(x, 0.0) - x * t_zeroone + jnp.log1p(jnp.exp(-jnp.abs(x)))
    bce = jnp.maximum(bce, 0.02)
    if focal_gamma != 0.0:
        pt = jnp.exp(-bce)
        bce = (1.0 - pt) ** focal_gamma * bce
    return jnp.where(t_zeroone != t, bce * t, bce)


def _make_inputs(key, shape):
    kx, kt, km = jax.random.split(key, 3)
    x = jax.random.normal(kx, shape, dtype=jnp.float32)
    raw = jax.random.uniform(kt, shape, dtype=jnp.float32)
    sel = jax.random.uniform(km, shape, dtype=jnp.float32)
    # Targets: mixture of 0, fractional positives (weights), and exact 1.0
    t = jnp.where(sel < 0.4, 0.0, jnp.where(sel < 0.7, raw, 1.0))
    return x, t


if __name__ == "__main__":
    key = jax.random.PRNGKey(0)

    # Small NCHW-shaped logits / targets, consistent with a pifpaf head output.
    B, C, H, W = 2, 4, 16, 16
    x, t = _make_inputs(key, (B, C, H, W))

    # Default module config: focal_gamma=0.0
    out = bce_loss(x, t, focal_gamma=0.0)
    jax.block_until_ready(out)
    ref = _bce_reference(x, t, focal_gamma=0.0)
    assert out.shape == x.shape and out.dtype == jnp.float32
    assert jnp.allclose(out, ref, atol=1e-5, rtol=1e-5), "mismatch (gamma=0)"

    # Focal branch (focal_gamma=2.0, integer fast path)
    out_f = bce_loss(x, t, focal_gamma=2.0)
    jax.block_until_ready(out_f)
    ref_f = _bce_reference(x, t, focal_gamma=2.0)
    assert jnp.allclose(out_f, ref_f, atol=1e-5, rtol=1e-5), "mismatch (gamma=2)"

    # Non-integer gamma (generic pow path)
    out_g = bce_loss(x, t, focal_gamma=0.5)
    jax.block_until_ready(out_g)
    ref_g = _bce_reference(x, t, focal_gamma=0.5)
    assert jnp.allclose(out_g, ref_g, atol=1e-4, rtol=1e-4), "mismatch (gamma=0.5)"

    # Shape that exercises the lane-pad path (n % 128 != 0)
    x2, t2 = _make_inputs(jax.random.PRNGKey(1), (2, 4, 15, 17))
    out2 = bce_loss(x2, t2, focal_gamma=0.0)
    jax.block_until_ready(out2)
    ref2 = _bce_reference(x2, t2, focal_gamma=0.0)
    assert jnp.allclose(out2, ref2, atol=1e-5, rtol=1e-5), "mismatch (padded)"

    # Shape with rows not a multiple of 8 (full-extent single block path)
    x3, t3 = _make_inputs(jax.random.PRNGKey(2), (1, 1, 100, 128))
    out3 = bce_loss(x3, t3, focal_gamma=2.0)
    jax.block_until_ready(out3)
    ref3 = _bce_reference(x3, t3, focal_gamma=2.0)
    assert jnp.allclose(out3, ref3, atol=1e-5, rtol=1e-5), "mismatch (full-extent)"

    # Large-ish shape that exercises multiple grid blocks / partial last block
    x4, t4 = _make_inputs(jax.random.PRNGKey(3), (4, 17, 33, 48))
    out4 = bce_loss(x4, t4, focal_gamma=2.0)
    jax.block_until_ready(out4)
    ref4 = _bce_reference(x4, t4, focal_gamma=2.0)
    assert jnp.allclose(out4, ref4, atol=1e-5, rtol=1e-5), "mismatch (multi-block)"

    # bf16 I/O path (16-row sublane granularity, native-dtype traffic)
    xb = x.astype(jnp.bfloat16)
    tb = t.astype(jnp.bfloat16)
    out_b = bce_loss(xb, tb, focal_gamma=2.0)
    jax.block_until_ready(out_b)
    ref_b = _bce_reference(xb, tb, focal_gamma=2.0).astype(jnp.bfloat16)
    assert out_b.dtype == jnp.bfloat16
    assert jnp.allclose(out_b.astype(jnp.float32), ref_b.astype(jnp.float32),
                        atol=2e-2, rtol=2e-2), "mismatch (bf16)"

    print("KERNEL_OK")
</pallas_src>

<mosaic_0001>
module attributes {stable_mosaic.version = 11 : i64} {
  func.func @_bce_kernel(%arg0: i32, %arg1: memref<16x128xf32, #tpu.memory_space<vmem>>, %arg2: memref<16x128xf32, #tpu.memory_space<vmem>>, %arg3: memref<16x128xf32, #tpu.memory_space<vmem>>) attributes {dimension_semantics = [#tpu.dimension_semantics<parallel>], iteration_bounds = array<i64: 1>, scalar_prefetch = 0 : i64, scratch_operands = 0 : i64, tpu.core_type = #tpu.core_type<tc>, window_params = [{transform_indices = @transform_0, window_bounds = array<i64: 16, 128>}, {transform_indices = @transform_1, window_bounds = array<i64: 16, 128>}, {transform_indices = @transform_2, window_bounds = array<i64: 16, 128>}]} {
    %c0 = arith.constant 0 : index
    %c0_0 = arith.constant 0 : index
    %0 = vector.load %arg1[%c0, %c0_0] : memref<16x128xf32, #tpu.memory_space<vmem>>, vector<16x128xf32>
    %c0_1 = arith.constant 0 : index
    %c0_2 = arith.constant 0 : index
    %1 = vector.load %arg2[%c0_1, %c0_2] : memref<16x128xf32, #tpu.memory_space<vmem>>, vector<16x128xf32>
    %cst = arith.constant 0.000000e+00 : f32
    %2 = vector.broadcast %cst : f32 to vector<16x128xf32>
    %3 = arith.cmpf ogt, %1, %2 : vector<16x128xf32>
    %cst_3 = arith.constant 1.000000e+00 : f32
    %4 = vector.broadcast %cst_3 : f32 to vector<16x128xf32>
    %5 = arith.select %3, %4, %1 : vector<16x128xi1>, vector<16x128xf32>
    %cst_4 = arith.constant 0.000000e+00 : f32
    %6 = vector.broadcast %cst_4 : f32 to vector<16x128xf32>
    %7 = arith.maximumf %0, %6 : vector<16x128xf32>
    %8 = arith.mulf %0, %5 : vector<16x128xf32>
    %9 = arith.subf %7, %8 : vector<16x128xf32>
    %10 = math.absf %0 : vector<16x128xf32>
    %cst_5 = arith.constant 0.000000e+00 : f32
    %11 = vector.broadcast %cst_5 : f32 to vector<16x128xf32>
    %12 = arith.subf %11, %10 : vector<16x128xf32>
    %13 = math.exp %12 : vector<16x128xf32>
    %14 = math.log1p %13 : vector<16x128xf32>
    %15 = arith.addf %9, %14 : vector<16x128xf32>
    %cst_6 = arith.constant 2.000000e-02 : f32
    %16 = vector.broadcast %cst_6 : f32 to vector<16x128xf32>
    %17 = arith.maximumf %15, %16 : vector<16x128xf32>
    %18 = arith.cmpf one, %5, %1 : vector<16x128xf32>
    %19 = arith.mulf %17, %1 : vector<16x128xf32>
    %20 = arith.select %18, %19, %17 : vector<16x128xi1>, vector<16x128xf32>
    %c0_7 = arith.constant 0 : index
    %c0_8 = arith.constant 0 : index
    %21 = vector.load %arg3[%c0_7, %c0_8] : memref<16x128xf32, #tpu.memory_space<vmem>>, vector<16x128xf32>
    tpu.vector_store %arg3[%c0_7, %c0_8], %20 {strides = array<i32>} : memref<16x128xf32, #tpu.memory_space<vmem>>, vector<16x128xf32>,
    return
  }
  func.func @transform_0(%arg0: i32) -> (i32, i32) {
    %c0_i32 = arith.constant 0 : i32
    %c0_i32_0 = arith.constant 0 : i32
    return %arg0, %c0_i32 : i32, i32
  }
  func.func @transform_1(%arg0: i32) -> (i32, i32) {
    %c0_i32 = arith.constant 0 : i32
    %c0_i32_0 = arith.constant 0 : i32
    return %arg0, %c0_i32 : i32, i32
  }
  func.func @transform_2(%arg0: i32) -> (i32, i32) {
    %c0_i32 = arith.constant 0 : i32
    %c0_i32_0 = arith.constant 0 : i32
    return %arg0, %c0_i32 : i32, i32
  }
}

</mosaic_0001>

<bundles_post_ra>
// kernel: tpu_custom_call.1
= control target key start
LH: loop header
LB: loop body
LE: loop exit
PB: predicated region body
PF: predicated region fallthrough
CT: control target
= control target key end

     0   :  { %7 = vsyncpa [#allocation3], 0  ;;  %s260_s0 = inlined_call_operand.hbm [shape: f32[16,128], index: 0, kind: input, shape index: {}]   ;;  %s261_s1 = inlined_call_operand.hbm [shape: f32[16,128], index: 1, kind: input, shape index: {}]   ;;  %s262_s2 = inlined_call_operand.hbm [shape: f32[16,128], index: 2, kind: output, shape index: {}]  }
   0x1   :  { %8 = vsyncpa [#allocation6], 0 }
   0x2   :  { %9 = vsyncpa [#allocation4], 0  ;;  %s195_s9 = smov [#allocation2]   ;;  %s123_s13 = scalar_lea.hbm %s260_s0, 256 }
   0x3   :  { %s15_s10 = sshll.u32 %s195_s9, 4  ;;  %p124_p0 = scmp.ne.s32.totalorder %s260_s0, %s123_s13  ;;  %s16_s10 = int_to_ptr.vmem [resolvable:$true] %s15_s10 }
   0x4   :  { %p127_p1 = scmp.lt.u32.totalorder %s123_s13, %s260_s0 }
   0x6   :  { %p129_p2 = pnand %p127_p1, %p124_p0 }
   0x8   :  { %132 = shalt.err (!%p129_p2)
}
   0x9   :  { %s133_s18 = scalar_lea.vmem %s16_s10, 256  ;;  %p138_p4 = scmp.lt.s32.totalorder %s16_s10, %s16_s10 }
   0xa   :  { %p134_p3 = scmp.ne.s32.totalorder %s16_s10, %s133_s18  ;;  %p139_p5 = scmp.lt.s32.totalorder %s133_s18, %s133_s18 }
   0xc   :  { %p140_p6 = por %p139_p5, %p138_p4 }
   0xe   :  { %p141_p7 = pnand %p140_p6, %p134_p3 }
  0x10   :  { %144 = shalt.err (!%p141_p7)
}
  0x11   :  { %s196_s19 = smov 128   ;;  %s197_s20 = smov 8  }
  0x12   :  { %21 = dma.hbm_to_vmem [thread:$0]  %s260_s0, 256, %s16_s10, [#allocation3], %s196_s19, %s196_s19, %s197_s20  }
  0x13   :  { %s198_s23 = smov [#allocation5]   ;;  %s145_s27 = scalar_lea.hbm %s261_s1, 256 }
  0x14   :  { %s27_s24 = sshll.u32 %s198_s23, 4  ;;  %p146_p8 = scmp.ne.s32.totalorder %s261_s1, %s145_s27  ;;  %s28_s24 = int_to_ptr.vmem [resolvable:$true] %s27_s24 }
  0x15   :  { %p149_p9 = scmp.lt.u32.totalorder %s145_s27, %s261_s1 }
  0x17   :  { %p151_p10 = pnand %p149_p9, %p146_p8 }
  0x19   :  { %154 = shalt.err (!%p151_p10)
}
  0x1a   :  { %s155_s4 = scalar_lea.vmem %s28_s24, 256  ;;  %p160_p12 = scmp.lt.s32.totalorder %s28_s24, %s28_s24 }
  0x1b   :  { %p156_p11 = scmp.ne.s32.totalorder %s28_s24, %s155_s4  ;;  %p161_p13 = scmp.lt.s32.totalorder %s155_s4, %s155_s4 }
  0x1d   :  { %p162_p0 = por %p161_p13, %p160_p12 }
  0x1f   :  { %p163_p1 = pnand %p162_p0, %p156_p11 }
  0x21   :  { %166 = shalt.err (!%p163_p1)
}
  0x22   :  { %33 = dma.hbm_to_vmem [thread:$0]  %s261_s1, 256, %s28_s24, [#allocation6], %s196_s19, %s196_s19, %s197_s20  }
  0x23   :  { %189 = dma.done.wait [#allocation3], 256  }
  0x24   :  { %190 = vsyncadd [#allocation3], 4294967040 }
  0x25   :  { %191 = dma.done.wait [#allocation6], 256  }
  0x26   :  { %192 = vsyncadd [#allocation6], 4294967040  ;;  %v40_v0 = vld [vmem:[#allocation2] sm:$0xff]  ;;  %v41_v1 = vld [vmem:[#allocation2 + $0x8] sm:$0xff]  ;;  %s199_s1 = smov [#allocation7]  }
  0x27   :  { %v54_v2 = vand.u32 2147483647, %v40_v0  ;;  %v55_v3 = vand.u32 2147483647, %v41_v1  ;;  %v42_v9 = vld [vmem:[#allocation5] sm:$0xff]  ;;  %v43_v12 = vld [vmem:[#allocation5 + $0x8] sm:$0xff] }
  0x28   :  { %vm44_vm0 = vcmp.gt.f32.partialorder %v42_v9, 0.0  ;;  %vm45_vm1 = vcmp.gt.f32.partialorder %v43_v12, 0.0  ;;  %v48_v19 = vmax.f32 %v40_v0, 0.0  ;;  %v49_v23 = vmax.f32 %v41_v1, 0.0  ;;  %s97_s6 = sshll.u32 %s199_s1, 4  ;;  %s98_s6 = int_to_ptr.vmem [resolvable:$true] %s97_s6 }
  0x29   :  { %v56_v4 = vsub.f32 0.0, %v54_v2  ;;  %v57_v5 = vsub.f32 0.0, %v55_v3  ;;  %v46_v16 = vsel %vm44_vm0, 1.0, %v42_v9  ;;  %v47_v17 = vsel %vm45_vm1, 1.0, %v43_v12  ;;  %s167_s7 = scalar_lea.vmem %s98_s6, 256  ;;  %p172_p3 = scmp.lt.s32.totalorder %s98_s6, %s98_s6 }
  0x2a   :  { %v50_v20 = vmul.f32 %v46_v16, %v40_v0  ;;  %v51_v24 = vmul.f32 %v47_v17, %v41_v1  ;;  %vm84_vm4 = vcmp.ne.f32.partialorder %v46_v16, %v42_v9  ;;  %vm85_vm5 = vcmp.ne.f32.partialorder %v47_v17, %v43_v12  ;;  %p168_p2 = scmp.ne.s32.totalorder %s98_s6, %s167_s7  ;;  %p173_p4 = scmp.lt.s32.totalorder %s167_s7, %s167_s7 }
  0x2b   :  { %v58_v6 = vmul.f32 1.442695, %v56_v4  ;;  %v60_v7 = vmul.f32 1.442695, %v57_v5 }
  0x2c   :  { %v52_v28 = vsub.f32 %v48_v19, %v50_v20  ;;  %v53_v32 = vsub.f32 %v49_v23, %v51_v24  ;;  %p174_p5 = por %p173_p4, %p172_p3 }
  0x2d   :  { %115 = vpow2.f32 %v58_v6 }
  0x2e   :  { %117 = vpow2.f32 %v60_v7  ;;  %p175_p6 = pnand %p174_p5, %p168_p2 }
  0x37   :  { %v116_v8 = vpop.eup %115 }
  0x38   :  { %v118_v10 = vpop.eup %117  ;;  %v62_v11 = vadd.f32 1.0, %v116_v8  ;;  %v65_v14 = vmul.f32 -0.5, %v116_v8  ;;  %v68_v21 = vand.u32 2147483647, %v116_v8 }
  0x39   :  { %v71_v13 = vadd.f32 1.0, %v118_v10  ;;  %v74_v15 = vmul.f32 -0.5, %v118_v10  ;;  %v77_v25 = vand.u32 2147483647, %v118_v10 }
  0x3a   :  { %119 = vlog2.f32 %v62_v11  ;;  %v66_v18 = vadd.f32 1.0, %v65_v14  ;;  %vm69_vm2 = vcmp.lt.f32.partialorder %v68_v21, 0.0004427343 }
  0x3b   :  { %121 = vlog2.f32 %v71_v13  ;;  %v75_v22 = vadd.f32 1.0, %v74_v15  ;;  %vm78_vm3 = vcmp.lt.f32.partialorder %v77_v25, 0.0004427343 }
  0x3c   :  { %v67_v26 = vmul.f32 %v116_v8, %v66_v18 }
  0x3d   :  { %v76_v29 = vmul.f32 %v118_v10, %v75_v22 }
  0x44   :  { %v120_v27 = vpop.eup %119 }
  0x45   :  { %v122_v30 = vpop.eup %121  ;;  %v64_v31 = vmul.f32 0.6931472, %v120_v27 }
  0x46   :  { %v73_v33 = vmul.f32 0.6931472, %v122_v30 }
  0x47   :  { %v70_v34 = vsel %vm69_vm2, %v67_v26, %v64_v31 }
  0x48   :  { %v80_v35 = vadd.f32 %v70_v34, %v52_v28  ;;  %v79_v36 = vsel %vm78_vm3, %v76_v29, %v73_v33 }
  0x49   :  { %v81_v37 = vadd.f32 %v79_v36, %v53_v32 }
  0x4a   :  { %v82_v38 = vmax.f32 %v80_v35, 0.02 }
  0x4b   :  { %v83_v39 = vmax.f32 %v81_v37, 0.02 }
  0x4c   :  { %v86_v40 = vmul.f32 %v82_v38, %v42_v9 }
  0x4d   :  { %v87_v41 = vmul.f32 %v83_v39, %v43_v12 }
  0x4e   :  { %v88_v42 = vsel %vm84_vm4, %v86_v40, %v82_v38 }
  0x4f   :  { %90 = vst [vmem:[#allocation7] sm:$0xff] %v88_v42  ;;  %v89_v43 = vsel %vm85_vm5, %v87_v41, %v83_v39 }
  0x50   :  { %91 = vst [vmem:[#allocation7 + $0x8] sm:$0xff] %v89_v43 }
  0x51   :  { %178 = shalt.err (!%p175_p6)
}
  0x52   :  { %s179_s10 = scalar_lea.hbm %s262_s2, 256 }
  0x53   :  { %p180_p7 = scmp.ne.s32.totalorder %s262_s2, %s179_s10  ;;  %p183_p8 = scmp.lt.u32.totalorder %s179_s10, %s262_s2 }
  0x55   :  { %p185_p9 = pnand %p183_p8, %p180_p7 }
  0x57   :  { %188 = shalt.err (!%p185_p9)
}
  0x58   :  { %103 = dma.vmem_to_hbm [thread:$0]  %s98_s6, 256, %s262_s2, [#allocation4], %s196_s19, %s196_s19, %s197_s20  }
  0x59   :  { %193 = dma.done.wait [#allocation4], 256  }
  0x5a   :  { %194 = vsyncadd [#allocation4], 4294967040 }
  0x5b   :  { %107 = vsyncpa [#allocation3], 1 }
  0x5c   :  { %108 = vsyncpa [#allocation6], 1 }
  0x5d   :  { %109 = vsyncpa [#allocation4], 1 }

</bundles_post_ra>
